<compile_context>
chip_gen: v7x
topology: tpu7x:2x2x1
jax: 0.10.0
libtpu: 0.0.40
codegen_flags: <defaults>
</compile_context>

<pallas_src>
import functools

import jax
import jax.numpy as jnp
from jax.experimental import pallas as pl
from jax.experimental.pallas import tpu as pltpu

LEAKY_SLOPE = 0.01  # nn.LeakyReLU() default negative_slope


# ---------------------------------------------------------------------------
# VMEM sizing (generation-aware, conservative fallback).
# ---------------------------------------------------------------------------
def _vmem_config():
    cap = None
    try:
        cap = getattr(pltpu.get_tpu_info(), "vmem_capacity_bytes", None)
    except Exception:
        cap = None
    if cap is not None and cap >= (96 << 20):
        # v5e / v6e: 128 MiB physical VMEM -> large tiles, fewer grid steps.
        return 64 << 20, 96 << 20
    # v7x (64 MiB per TensorCore) or unknown: leave headroom.
    return 36 << 20, 48 << 20


# ---------------------------------------------------------------------------
# Single-pass kernel: one (TB, C, HW) slab per grid step.
# ---------------------------------------------------------------------------
def _se_kernel(x_ref, w1t_ref, w2t_ref, o_ref, *, inv_hw):
    # Squeeze: pooled sum in f32 (read the tile; don't keep it live afterwards).
    y = jnp.sum(x_ref[...], axis=-1, dtype=jnp.float32) * inv_hw            # (TB, C)
    # Excitation (tiny, f32): Linear -> LeakyReLU -> Linear -> Sigmoid.
    h = jnp.dot(y, w1t_ref[...], preferred_element_type=jnp.float32)        # (TB, C_r)
    h = jnp.where(h > 0, h, LEAKY_SLOPE * h)
    s = jnp.dot(h, w2t_ref[...], preferred_element_type=jnp.float32)        # (TB, C)
    gate = jax.nn.sigmoid(s).astype(o_ref.dtype)
    # Scale: re-read the input tile and store in native dtype.
    o_ref[...] = x_ref[...] * gate[:, :, None]


def _se_single_pass(x_flat, w1t, w2t, budget, limit, in_place):
    B, C, HW = x_flat.shape
    itemsize = x_flat.dtype.itemsize
    bytes_per_row = 4 * C * HW * itemsize            # 2 input + 2 output buffers
    tb = max(1, min(budget // bytes_per_row, B))
    if B >= 2:
        # >= 2 grid steps: pipelining overlap, and both v7x TensorCores busy.
        tb = min(tb, pl.cdiv(B, 2))
    grid = (pl.cdiv(B, tb),)

    kernel = functools.partial(_se_kernel, inv_hw=1.0 / HW)
    return pl.pallas_call(
        kernel,
        out_shape=jax.ShapeDtypeStruct((B, C, HW), x_flat.dtype),
        grid_spec=pltpu.PrefetchScalarGridSpec(
            num_scalar_prefetch=0,
            grid=grid,
            in_specs=[
                pl.BlockSpec((tb, C, HW), lambda b: (b, 0, 0)),
                pl.BlockSpec(w1t.shape, lambda b: (0, 0)),   # VMEM-resident weights
                pl.BlockSpec(w2t.shape, lambda b: (0, 0)),
            ],
            out_specs=pl.BlockSpec((tb, C, HW), lambda b: (b, 0, 0)),
        ),
        compiler_params=pltpu.CompilerParams(
            dimension_semantics=("parallel",),
            vmem_limit_bytes=limit,
        ),
        input_output_aliases=({0: 0} if in_place else {}),
    )(x_flat, w1t, w2t)


# ---------------------------------------------------------------------------
# Two-pass fallback: spatial (HW) tiling for large feature maps.
# ---------------------------------------------------------------------------
def _se_gate_kernel(x_ref, w1t_ref, w2t_ref, g_ref, acc_ref,
                    *, inv_hw, hw, thw, mask_tail):
    s = pl.program_id(1)

    @pl.when(s == 0)
    def _():
        acc_ref[...] = jnp.zeros_like(acc_ref)

    x = x_ref[...].astype(jnp.float32)                       # (1, C, thw)
    if mask_tail:
        # Pallas does not zero-fill partial-block reads: mask the ragged tail.
        col = jax.lax.broadcasted_iota(jnp.int32, x.shape, 2) + s * thw
        x = jnp.where(col < hw, x, 0.0)
    acc_ref[...] += jnp.sum(x, axis=-1)                      # (1, C)

    @pl.when(s == pl.num_programs(1) - 1)
    def _():
        y = acc_ref[...] * inv_hw                                            # (1, C)
        h = jnp.dot(y, w1t_ref[...], preferred_element_type=jnp.float32)     # (1, C_r)
        h = jnp.where(h > 0, h, LEAKY_SLOPE * h)
        z = jnp.dot(h, w2t_ref[...], preferred_element_type=jnp.float32)     # (1, C)
        g_ref[...] = jax.nn.sigmoid(z)[:, :, None]                           # (1, C, 1)


def _se_apply_kernel(g_ref, x_ref, o_ref):
    gate = g_ref[...].astype(o_ref.dtype)                    # (1, C, 1)
    o_ref[...] = x_ref[...] * gate


def _se_two_pass(x_flat, w1t, w2t, budget, limit):
    B, C, HW = x_flat.shape
    itemsize = x_flat.dtype.itemsize
    # Largest 128-multiple spatial tile whose double-buffered in+out fits the budget.
    thw = max(128, (budget // (4 * C * itemsize)) // 128 * 128)
    thw = min(thw, HW)
    # TODO(synk): extreme channel counts could still overflow VMEM at thw=128;
    # a channel-tiled variant would be needed there.
    ns = pl.cdiv(HW, thw)
    grid = (B, ns)

    gate_kernel = functools.partial(
        _se_gate_kernel, inv_hw=1.0 / HW, hw=HW, thw=thw,
        mask_tail=(HW % thw != 0))

    gates = pl.pallas_call(
        gate_kernel,
        out_shape=jax.ShapeDtypeStruct((B, C, 1), jnp.float32),
        grid_spec=pltpu.PrefetchScalarGridSpec(
            num_scalar_prefetch=0,
            grid=grid,
            in_specs=[
                pl.BlockSpec((1, C, thw), lambda b, s: (b, 0, s)),
                pl.BlockSpec(w1t.shape, lambda b, s: (0, 0)),
                pl.BlockSpec(w2t.shape, lambda b, s: (0, 0)),
            ],
            out_specs=pl.BlockSpec((1, C, 1), lambda b, s: (b, 0, 0)),
            scratch_shapes=[pltpu.VMEM((1, C), jnp.float32)],
        ),
        compiler_params=pltpu.CompilerParams(
            dimension_semantics=("parallel", "arbitrary"),
            vmem_limit_bytes=limit,
        ),
    )(x_flat, w1t, w2t)

    return pl.pallas_call(
        _se_apply_kernel,
        out_shape=jax.ShapeDtypeStruct((B, C, HW), x_flat.dtype),
        grid_spec=pltpu.PrefetchScalarGridSpec(
            num_scalar_prefetch=0,
            grid=grid,
            in_specs=[
                pl.BlockSpec((1, C, 1), lambda b, s: (b, 0, 0)),
                pl.BlockSpec((1, C, thw), lambda b, s: (b, 0, s)),
            ],
            out_specs=pl.BlockSpec((1, C, thw), lambda b, s: (b, 0, s)),
        ),
        compiler_params=pltpu.CompilerParams(
            dimension_semantics=("parallel", "arbitrary"),
            vmem_limit_bytes=limit,
        ),
    )(gates, x_flat)


# ---------------------------------------------------------------------------
# Public wrapper.
# ---------------------------------------------------------------------------
def se_block(x_nchw, w1, w2, *, vmem_budget_bytes=None, vmem_limit_bytes=None,
             in_place=False):
    """x_nchw: (B, C, H, W). w1: (C//r, C), w2: (C, C//r) — PyTorch Linear layout."""
    B, C, H, W = x_nchw.shape
    HW = H * W

    budget, limit = _vmem_config()
    if vmem_budget_bytes is not None:
        budget = vmem_budget_bytes
    if vmem_limit_bytes is not None:
        limit = vmem_limit_bytes

    x_flat = x_nchw.reshape(B, C, HW)
    w1t = jnp.transpose(w1).astype(jnp.float32)   # (C, C_r)
    w2t = jnp.transpose(w2).astype(jnp.float32)   # (C_r, C)

    bytes_per_row = 4 * C * HW * x_flat.dtype.itemsize
    if bytes_per_row <= budget:
        out = _se_single_pass(x_flat, w1t, w2t, budget, limit, in_place)
    else:
        out = _se_two_pass(x_flat, w1t, w2t, budget, limit)
    return out.reshape(B, C, H, W)


def se_block_ref(x, w1, w2):
    """Pure-JAX reference of the PyTorch forward, for correctness checking."""
    y = jnp.mean(x, axis=(2, 3))                     # AdaptiveAvgPool2d(1) + view
    h = y @ w1.T
    h = jnp.where(h > 0, h, LEAKY_SLOPE * h)
    s = jax.nn.sigmoid(h @ w2.T)
    return x * s[:, :, None, None]


if __name__ == "__main__":
    C, reduction = 32, 16
    C_r = C // reduction

    key = jax.random.PRNGKey(0)
    kx1, kx2, kx3, k1, k2 = jax.random.split(key, 5)
    # PyTorch Linear layout: (out_features, in_features).
    w1 = jax.random.normal(k1, (C_r, C), dtype=jnp.float32) * (1.0 / jnp.sqrt(C))
    w2 = jax.random.normal(k2, (C, C_r), dtype=jnp.float32) * (1.0 / jnp.sqrt(C_r))

    # 1) Main single-pass path, evenly divisible shapes.
    x1 = jax.random.normal(kx1, (2, C, 16, 16), dtype=jnp.float32)
    out1 = jax.block_until_ready(se_block(x1, w1, w2))
    ref1 = jax.block_until_ready(se_block_ref(x1, w1, w2))
    assert out1.shape == x1.shape
    assert jnp.allclose(out1, ref1, atol=1e-5, rtol=1e-5), "mismatch (single-pass)"

    # 2) Single-pass path with ragged batch tail and non-128 spatial extent.
    x2 = jax.random.normal(kx2, (3, C, 5, 6), dtype=jnp.float32)
    out2 = jax.block_until_ready(se_block(x2, w1, w2))
    ref2 = jax.block_until_ready(se_block_ref(x2, w1, w2))
    assert jnp.allclose(out2, ref2, atol=1e-5, rtol=1e-5), "mismatch (ragged batch)"

    # 3) Two-pass HW-tiled fallback (forced via tiny VMEM budget), ragged spatial tail.
    x3 = jax.random.normal(kx3, (2, C, 18, 18), dtype=jnp.float32)
    out3 = jax.block_until_ready(se_block(x3, w1, w2, vmem_budget_bytes=64 * 1024))
    ref3 = jax.block_until_ready(se_block_ref(x3, w1, w2))
    assert jnp.allclose(out3, ref3, atol=1e-5, rtol=1e-5), "mismatch (two-pass fallback)"

    print("KERNEL_OK")
</pallas_src>

<mosaic_0001>
module attributes {stable_mosaic.version = 11 : i64} {
  func.func @_se_kernel(%arg0: i32, %arg1: memref<1x32x256xf32, #tpu.memory_space<vmem>>, %arg2: memref<32x2xf32, #tpu.memory_space<vmem>>, %arg3: memref<2x32xf32, #tpu.memory_space<vmem>>, %arg4: memref<1x32x256xf32, #tpu.memory_space<vmem>>) attributes {dimension_semantics = [#tpu.dimension_semantics<parallel>], iteration_bounds = array<i64: 2>, scalar_prefetch = 0 : i64, scratch_operands = 0 : i64, tpu.core_type = #tpu.core_type<tc>, window_params = [{transform_indices = @transform_0, window_bounds = array<i64: 1, 32, 256>}, {pipeline_mode = #tpu.pipeline_mode<synchronous>, transform_indices = @transform_1, window_bounds = array<i64: 32, 2>}, {pipeline_mode = #tpu.pipeline_mode<synchronous>, transform_indices = @transform_2, window_bounds = array<i64: 2, 32>}, {transform_indices = @transform_3, window_bounds = array<i64: 1, 32, 256>}]} {
    %c0 = arith.constant 0 : index
    %c0_0 = arith.constant 0 : index
    %c0_1 = arith.constant 0 : index
    %0 = vector.load %arg1[%c0, %c0_0, %c0_1] : memref<1x32x256xf32, #tpu.memory_space<vmem>>, vector<1x32x256xf32>
    %cst = arith.constant dense<0.000000e+00> : vector<1x32xf32>
    %1 = vector.multi_reduction <add>, %0, %cst [2] : vector<1x32x256xf32> to vector<1x32xf32>
    %cst_2 = arith.constant 3.906250e-03 : f32
    %2 = vector.broadcast %cst_2 : f32 to vector<1x32xf32>
    %3 = arith.mulf %1, %2 : vector<1x32xf32>
    %c0_3 = arith.constant 0 : index
    %c0_4 = arith.constant 0 : index
    %4 = vector.load %arg2[%c0_3, %c0_4] : memref<32x2xf32, #tpu.memory_space<vmem>>, vector<32x2xf32>
    %cst_5 = arith.constant dense<0.000000e+00> : vector<1x2xf32>
    %5 = tpu.matmul %3, %4, %cst_5 {dimension_numbers = #tpu.dot_dimension_numbers<[1], [0], [0], [1], [0, 0, 1, 1], [], []>} : vector<1x32xf32>, vector<32x2xf32>, vector<1x2xf32> -> vector<1x2xf32>
    %cst_6 = arith.constant 0.000000e+00 : f32
    %6 = vector.broadcast %cst_6 : f32 to vector<1x2xf32>
    %7 = arith.cmpf ogt, %5, %6 : vector<1x2xf32>
    %cst_7 = arith.constant 0.00999999977 : f32
    %8 = vector.broadcast %cst_7 : f32 to vector<1x2xf32>
    %9 = arith.mulf %8, %5 : vector<1x2xf32>
    %10 = arith.select %7, %5, %9 : vector<1x2xi1>, vector<1x2xf32>
    %c0_8 = arith.constant 0 : index
    %c0_9 = arith.constant 0 : index
    %11 = vector.load %arg3[%c0_8, %c0_9] : memref<2x32xf32, #tpu.memory_space<vmem>>, vector<2x32xf32>
    %cst_10 = arith.constant dense<0.000000e+00> : vector<1x32xf32>
    %12 = tpu.matmul %10, %11, %cst_10 {dimension_numbers = #tpu.dot_dimension_numbers<[1], [0], [0], [1], [0, 0, 1, 1], [], []>} : vector<1x2xf32>, vector<2x32xf32>, vector<1x32xf32> -> vector<1x32xf32>
    %13 = arith.negf %12 : vector<1x32xf32>
    %14 = math.exp %13 : vector<1x32xf32>
    %cst_11 = arith.constant 1.000000e+00 : f32
    %15 = vector.broadcast %cst_11 : f32 to vector<1x32xf32>
    %16 = arith.addf %15, %14 : vector<1x32xf32>
    %17 = arith.divf %15, %16 : vector<1x32xf32>
    %c0_12 = arith.constant 0 : index
    %c0_13 = arith.constant 0 : index
    %c0_14 = arith.constant 0 : index
    %18 = vector.load %arg1[%c0_12, %c0_13, %c0_14] : memref<1x32x256xf32, #tpu.memory_space<vmem>>, vector<1x32x256xf32>
    %19 = vector.shape_cast %17 : vector<1x32xf32> to vector<1x32x1xf32>
    %20 = vector.broadcast %19 : vector<1x32x1xf32> to vector<1x32x256xf32>
    %21 = arith.mulf %18, %20 : vector<1x32x256xf32>
    %c0_15 = arith.constant 0 : index
    %c0_16 = arith.constant 0 : index
    %c0_17 = arith.constant 0 : index
    %22 = vector.load %arg4[%c0_15, %c0_16, %c0_17] : memref<1x32x256xf32, #tpu.memory_space<vmem>>, vector<1x32x256xf32>
    tpu.vector_store %arg4[%c0_15, %c0_16, %c0_17], %21 {strides = array<i32>} : memref<1x32x256xf32, #tpu.memory_space<vmem>>, vector<1x32x256xf32>,
    return
  }
  func.func @transform_0(%arg0: i32) -> (i32, i32, i32) {
    %c0_i32 = arith.constant 0 : i32
    %c0_i32_0 = arith.constant 0 : i32
    %c0_i32_1 = arith.constant 0 : i32
    return %arg0, %c0_i32, %c0_i32_0 : i32, i32, i32
  }
  func.func @transform_1(%arg0: i32) -> (i32, i32) {
    %c0_i32 = arith.constant 0 : i32
    %c0_i32_0 = arith.constant 0 : i32
    %c0_i32_1 = arith.constant 0 : i32
    return %c0_i32, %c0_i32_0 : i32, i32
  }
  func.func @transform_2(%arg0: i32) -> (i32, i32) {
    %c0_i32 = arith.constant 0 : i32
    %c0_i32_0 = arith.constant 0 : i32
    %c0_i32_1 = arith.constant 0 : i32
    return %c0_i32, %c0_i32_0 : i32, i32
  }
  func.func @transform_3(%arg0: i32) -> (i32, i32, i32) {
    %c0_i32 = arith.constant 0 : i32
    %c0_i32_0 = arith.constant 0 : i32
    %c0_i32_1 = arith.constant 0 : i32
    return %arg0, %c0_i32, %c0_i32_0 : i32, i32, i32
  }
}

</mosaic_0001>

<bundles_post_ra>
// kernel: tpu_custom_call.1
= control target key start
LH: loop header
LB: loop body
LE: loop exit
PB: predicated region body
PF: predicated region fallthrough
CT: control target
= control target key end

     0   :  { %8 = vsyncpa [#allocation3], 0  ;;  %s977_s0 = inlined_call_operand.hbm [shape: f32[2,32,256], index: 0, kind: input, shape index: {}]   ;;  %s978_s1 = inlined_call_operand.vmem [shape: f32[32,2], index: 1, kind: input, shape index: {}]   ;;  %s979_s2 = inlined_call_operand.vmem [shape: f32[2,32], index: 2, kind: input, shape index: {}]   ;;  %s980_s3 = inlined_call_operand.hbm [shape: f32[2,32,256], index: 3, kind: output, shape index: {}]  }
   0x1   :  { %10 = vsyncpa [#allocation3 + $0x1], 0 }
   0x2   :  { %11 = vsyncpa [#allocation4], 0 }
   0x3   :  { %13 = vsyncpa [#allocation4 + $0x1], 0  ;;  %s764_s12 = smov 0   ;;  %s766_s13 = smov 0  }
   0x4   :  { %s768_s14 = smov 0   ;;  %s770_s15 = smov 0  }
   0x5 LB: > { %s785_s16 = sadd.s32 4294967295, %s733_s15   ;;  %s531_s17 = sadd.s32 4294967294, %s733_s15   ;;  %s733_s15 = sphi %s770_s15, %s993_s15   ;;  %s729_s14 = sphi %s768_s14, %s992_s14   ;;  %s725_s13 = sphi %s766_s13, %s991_s13   ;;  %s721_s12 = sphi %s764_s12, %s990_s12  }
   0x6   : > { %s789_s18 = sadd.s32 1, %s733_s15   ;;  %s26_s19 = sadd.s32 1, %s729_s14 }
   0x7   : > { %s23_s20 = ssub.s32 %s733_s15, %s789_s18  ;;  %p33_p0 = scmp.ne.s32.totalorder %s729_s14, %s725_s13 }
   0x8   : > { %p24_p1 = scmp.eq.s32.totalorder %s23_s20, 0  ;;  %p34_p2 = scmp.eq.s32.totalorder %s733_s15, 0 }
   0x9   : > { %p39_p3 = scmp.ne.s32.totalorder %s725_s13, %s721_s12  ;;  %p40_p4 = scmp.eq.s32.totalorder %s785_s16, 0 }
   0xa   : > { %s801_s21 = scalar_select %p24_p1, %s729_s14, %s26_s19  }
   0xb   : > { %p803_p5 = por %p34_p2, %p33_p0  ;;  %p807_p6 = por %p40_p4, %p39_p3 }
   0xc   : > { %p105_p7 = scmp.eq.s32.totalorder %s785_s16, 1  ;;  %p111_p8 = scmp.eq.s32.totalorder %s531_s17, 1 }
   0xd   : > { %p592_p10 = scmp.lt.s32.totalorder %s733_s15, 2  ;;  %s137_s26 = sand.u32 1, %s729_s14  }
   0xe   : > { %p814_p11 = por %p105_p7, %p33_p0  ;;  %p818_p12 = por %p111_p8, %p39_p3 }
   0xf   : > { %s549_s27 = sshll.u32 %s733_s15, 10  ;;  %s534_s28 = sshll.u32 %s137_s26, 6 }
  0x10   : > { %s984_s24 = scalar_select %p814_p11, 1, 0 }
  0x11   : > { %s985_s25 = scalar_select %p818_p12, 1, 0 }
  0x12   : > { %s827_s4 = scalar_lea.hbm %s977_s0, %s549_s27  ;;  %s141_s5 = scalar_lea.vmem [#allocation2], %s534_s28 }
  0x13   : > { %s148_s6 = sshll.u32 %s141_s5, 4  ;;  %p831_p13 = pnand %p592_p10, %p803_p5  ;;  %s835_s6 = int_to_ptr.vmem [resolvable:$true] %s148_s6 }
  0x14   : > { %s837_s8 = scalar_lea.sflag [#allocation3], %s137_s26  ;;  %s637_s9 = scalar_lea.hbm %s827_s4, 1024 }
  0x15   : > { %p638_p0 = scmp.ne.s32.totalorder %s827_s4, %s637_s9  ;;  %p639_p1 = pneg %p831_p13 }
  0x16   : > { %s642_s17 = scalar_lea.hbm %s977_s0, 2048  ;;  %p643_p4 = scmp.lt.u32.totalorder %s827_s4, %s977_s0 }
  0x17   : > { %p640_p2 = pnand %p639_p1, %p638_p0  ;;  %p644_p5 = scmp.lt.u32.totalorder %s642_s17, %s637_s9 }
  0x18   : > { %p646_p8 = scmp.lt.u32.totalorder %s637_s9, %s827_s4 }
  0x19   : > { %p641_p3 = pneg %p640_p2  ;;  %p645_p7 = por %p644_p5, %p643_p4 }
  0x1b   : > { %p647_p10 = por %p646_p8, %p645_p7 }
  0x1d   : > { %p648_p9 = pnand %p647_p10, %p641_p3 }
  0x1f   : > { %651 = shalt.err (!%p648_p9)
}
  0x20   : > { %s652_s22 = scalar_lea.vmem %s835_s6, 1024  ;;  %s735_s26 = smov [#allocation2]  }
  0x21   : > { %p653_p0 = scmp.ne.s32.totalorder %s835_s6, %s652_s22  ;;  %s657_s27 = sshll.u32 %s735_s26, 4  ;;  %s658_s27 = int_to_ptr.vmem [resolvable:$false] %s657_s27 }
  0x22   : > { %s659_s28 = scalar_lea.vmem %s658_s27, 2048  ;;  %p660_p11 = scmp.lt.s32.totalorder %s835_s6, %s658_s27 }
  0x23   : > { %p655_p2 = pnand %p653_p0, %p639_p1  ;;  %p661_p4 = scmp.lt.s32.totalorder %s659_s28, %s652_s22 }
  0x25   : > { %p656_p12 = pneg %p655_p2  ;;  %p662_p5 = por %p661_p4, %p660_p11 }
  0x27   : > { %p663_p7 = pnand %p662_p5, %p656_p12 }
  0x29   : > { %666 = shalt.err (!%p663_p7)
}
  0x2a   : > { %s736_s29 = smov 256   ;;  %s737_s30 = smov 16  }
  0x2b   : > { %587 = dma.hbm_to_vmem [thread:$0]  (!%p831_p13), %s827_s4, 1024, %s835_s6, %s837_s8, %s736_s29, %s736_s29, %s737_s30  }
  0x2c   : > { %p537_p9 = scmp.ge.s32.totalorder %s733_s15, 1  ;;  %p156_p1 = scmp.lt.s32.totalorder %s733_s15, 3 }
  0x2e   : > { %p157_p3 = pnand %p537_p9, %p156_p1 }
  0x2f   : > { %s868_s5 = sand.u32 (!%p157_p3), 1, %s725_s13  }
  0x30   : > { %160 = sbr.rel (%p157_p3) target bundleno = 807 (0x327), region = 32  ;;  %s538_s9 = sshll.u32 (!%p157_p3), %s868_s5, 6 }
  0x31   : > { %s163_s10 = scalar_lea.sflag (!%p157_p3), [#allocation3], %s868_s5  ;;  %s166_s11 = scalar_lea.vmem (!%p157_p3), [#allocation2], %s538_s9 }
  0x37   : > { %712 = dma.done.wait (%p807_p6), %s163_s10, 1024  }
  0x38   : > { %714 = vsyncadd (%p807_p6), %s163_s10, 4294966272  ;;  %v878_v0 = vld [vmem:[%s166_s11] sm:$0xff]  ;;  %v880_v1 = vld [vmem:[%s166_s11 + $0x8] sm:$0xff]  ;;  %v738_v15 = vmov 0.0|0.0   ;;  %vm739_vm0 = vmmov 0   ;;  %v740_v19 = vmov 0.0   ;;  %v221_v20 = vlaneseq }
  0x39   : > { %v882_v2 = vld [vmem:[%s166_s11 + $0x20] sm:$0xff]  ;;  %v197_v3 = vadd.f32 %v880_v1, %v878_v0  ;;  %v886_v4 = vld [vmem:[%s166_s11 + $0x28] sm:$0xff]  ;;  %v888_v5 = vld [vmem:[%s166_s11 + $0x10] sm:$0xff]  ;;  %574 = vmatprep.subr.bf16.mxu0 %v738_v15  ;;  %566 = vmatprep.mubr.msk.f32.mxu0 %vm739_vm0, %v740_v19  ;;  %vm232_vm1 = vcmask 130112   ;;  %vm239_vm2 = vcmask 195712   ;;  %vm246_vm3 = vcmask 261312  }
  0x3a   : > { %v890_v6 = vld [vmem:[%s166_s11 + $0x18] sm:$0xff]  ;;  %v203_v7 = vadd.f32 %v886_v4, %v882_v2  ;;  %v894_v8 = vld [vmem:[%s166_s11 + $0x30] sm:$0xff]  ;;  %v213_v12 = vld [vmem:[%s978_s1] sm:$0xff]  ;;  %569 = vmatprep.subr.mxu1 %v740_v19  ;;  %571 = vmatprep.mubr.msk.f32.mxu1 %vm739_vm0, %v740_v19  ;;  %v222_v21 = vand.u32 127, %v221_v20  ;;  %v224_v22 = vshrl.u32 %v221_v20, 7  ;;  %vm248_vm4 = vcmask 261120  }
  0x3b   : > { %v896_v9 = vld [vmem:[%s166_s11 + $0x38] sm:$0xff]  ;;  %198 = vadd.xlane.f32.xlu0 %v197_v3  ;;  %v200_v10 = vadd.f32 %v890_v6, %v888_v5  ;;  %v214_v13 = vld [vmem:[%s978_s1 + $0x8] sm:$0xff]  ;;  %v215_v16 = vld [vmem:[%s978_s1 + $0x10] sm:$0xff]  ;;  %vm329_vm5 = vcmask 1041408   ;;  %vm325_vm7 = vcmask 15360   ;;  %s188_s27 = scalar_lea.vmem [#allocation5], %s538_s9 }
  0x3c   : > { %204 = vadd.xlane.f32.xlu1 %v203_v7  ;;  %v206_v11 = vadd.f32 %v896_v9, %v894_v8  ;;  %v575_v14 = vpack.c.bf16 %v214_v13, %v213_v12  ;;  %v216_v17 = vld [vmem:[%s978_s1 + $0x18] sm:$0xff]  ;;  %v227_v23 = vadd.s32 4294967288, %v222_v21  ;;  %v234_v25 = vadd.s32 4294967280, %v222_v21  ;;  %v324_v45 = vld [vmem:[%s979_s2] sm:$0x3]  ;;  %s458_s28 = sshll.u32 %s188_s27, 4  ;;  %s926_s28 = int_to_ptr.vmem [resolvable:$true] %s458_s28 }
  0x3d   : > { %v578_v18 = vpack.c.bf16 %v216_v17, %v215_v16  ;;  %v241_v26 = vadd.s32 4294967272, %v222_v21  ;;  %v225_v28 = vsub.s32 %v222_v21, %v224_v22  ;;  %570 = vmatpush3.msk.msra.mxu1 %vm329_vm5, %v324_v45  ;;  %v411_v55 = vsub.s32 0, %v224_v22  ;;  %s550_s29 = sshll.u32 %s785_s16, 10  ;;  %s445_s16 = scalar_lea.sflag [#allocation4], %s868_s5 }
  0x3e   : > { %576 = vmatpush3.bf16.msra.mxu0 %v575_v14  ;;  %v230_v30 = vsub.s32 %v227_v23, %v224_v22  ;;  %v237_v31 = vsub.s32 %v234_v25, %v224_v22  ;;  %s931_s10 = scalar_lea.hbm %s980_s3, %s550_s29  ;;  %s667_s11 = scalar_lea.vmem %s926_s28, 1024 }
  0x3f   : > { %201 = vadd.xlane.f32.xlu0 %v200_v10  ;;  %577 = vmatprep.subr.bf16.mxu0 %v738_v15  ;;  %v244_v34 = vsub.s32 %v241_v26, %v224_v22  ;;  %p668_p6 = scmp.ne.s32.totalorder %s926_s28, %s667_s11  ;;  %p987_p11 = scmp.ne.s32.totalorder %s984_s24, 0 }
  0x40   : > { %207 = vadd.xlane.f32.xlu1 %v206_v11  ;;  %s741_s23 = smov [#allocation5]  }
  0x41   : > { %p669_p12 = pnand %p668_p6, %p987_p11  ;;  %s671_s4 = sshll.u32 %s741_s23, 4  ;;  %s672_s4 = int_to_ptr.vmem [resolvable:$false] %s671_s4 }
  0x42   : > { %579 = vmatpush3.bf16.msra.mxu0 %v578_v18  ;;  %s673_s6 = scalar_lea.vmem %s672_s4, 2048  ;;  %p674_p8 = scmp.lt.s32.totalorder %s926_s28, %s672_s4 }
  0x43   : > { %p670_p13 = pneg %p669_p12  ;;  %p675_p10 = scmp.lt.s32.totalorder %s673_s6, %s667_s11 }
  0x45   : > { %p676_p0 = por %p675_p10, %p674_p8 }
  0x47   : > { %p677_p2 = pnand %p676_p0, %p670_p13 }
  0xc8   : > { %v199_v24 = vpop.xlane.xlu0 %198 }
  0xc9   : > { %v205_v27 = vpop.xlane.xlu1 %204  ;;  %v209_v29 = vmul.f32 0.00390625, %v199_v24 }
  0xca   : > { %v211_v32 = vmul.f32 0.00390625, %v205_v27 }
  0xcb   : > { %v226_v38 = vrot.slane %v209_v29, %v225_v28 }
  0xcc   : > { %v202_v33 = vpop.xlane.xlu0 %201  ;;  %v238_v40 = vrot.slane %v211_v32, %v237_v31 }
  0xcd   : > { %v210_v35 = vmul.f32 0.00390625, %v202_v33  ;;  %v208_v36 = vpop.xlane.xlu1 %207 }
  0xce   : > { %v212_v37 = vmul.f32 0.00390625, %v208_v36 }
  0xcf   : > { %v231_v39 = vrot.slane %v210_v35, %v230_v30 }
  0xd0   : > { %v245_v41 = vrot.slane %v212_v37, %v244_v34 }
  0xd1   : > { %v233_v42 = vsel %vm232_vm1, %v231_v39, %v226_v38 }
  0xd2   : > { %v240_v43 = vsel %vm239_vm2, %v238_v40, %v233_v42 }
  0xd3   : > { %v247_v44 = vsel %vm246_vm3, %v245_v41, %v240_v43 }
  0xd4   : > { %567 = vmatmul.mubr.msk.f32.vlgmr.msra.gmra.mrb[0].mxu0 %vm248_vm4, %v247_v44 }
 0x1a7   : > { %v317_v46 = vpop.f32.mrb[0].mxu0 }
 0x1a8   : > { %vm321_vm6 = vcmp.gt.f32.partialorder %v317_v46, 0.0  ;;  %v322_v47 = vmul.f32 0.01, %v317_v46  ;;  %v568_v48 = vpop.f32.mrb[1].mxu0 }
 0x1aa   : > { %v323_v49 = vsel %vm321_vm6, %v317_v46, %v322_v47 }
 0x1ab   : > { %572 = vmatmul.mubr.msk.f32.vlgmr.msra.gmra.mrb[0].mxu1 %vm325_vm7, %v323_v49 }
 0x27e   : > { %v399_v50 = vpop.f32.mrb[0].mxu1 }
 0x27f   : > { %v543_v51 = vmul.f32 -1.442695, %v399_v50  ;;  %v573_v52 = vpop.f32.mrb[1].mxu1 }
 0x281   : > { %633 = vpow2.f32 %v543_v51 }
 0x28b   : > { %v634_v53 = vpop.eup %633 }
 0x28c   : > { %v406_v54 = vadd.f32 1.0, %v634_v53 }
 0x28e   : > { %635 = vrcp.f32 %v406_v54 }
 0x298   : > { %v636_v56 = vpop.eup %635 }
 0x299   : > { %v412_v57 = vrot.slane %v636_v56, %v411_v55 }
 0x29b   : > { %418 = vbcast.lane.b32.xlu1 %v412_v57, 264  ;;  %414 = vbcast.lane.b32.xlu0 %v412_v57, 256 }
 0x29f   : > { %422 = vbcast.lane.b32.xlu1 %v412_v57, 272 }
 0x2a3   : > { %426 = vbcast.lane.b32.xlu1 %v412_v57, 280 }
 0x30d   : > { %v419_v58 = vpop.permute.xlu1 %418  ;;  %v415_v59 = vpop.permute.xlu0 %414 }
 0x30e   : > { %v430_v60 = vmul.f32 %v419_v58, %v888_v5  ;;  %v431_v61 = vmul.f32 %v419_v58, %v890_v6  ;;  %v428_v62 = vmul.f32 %v415_v59, %v878_v0  ;;  %v429_v63 = vmul.f32 %v415_v59, %v880_v1 }
 0x310   : > { %438 = vst [vmem:[%s188_s27 + $0x10] sm:$0xff] %v430_v60  ;;  %439 = vst [vmem:[%s188_s27 + $0x18] sm:$0xff] %v431_v61 }
 0x311   : > { %436 = vst [vmem:[%s188_s27] sm:$0xff] %v428_v62  ;;  %437 = vst [vmem:[%s188_s27 + $0x8] sm:$0xff] %v429_v63  ;;  %v423_v3 = vpop.permute.xlu1 %422 }
 0x312   : > { %v432_v7 = vmul.f32 %v423_v3, %v882_v2  ;;  %v433_v5 = vmul.f32 %v423_v3, %v886_v4 }
 0x314   : > { %440 = vst [vmem:[%s188_s27 + $0x20] sm:$0xff] %v432_v7  ;;  %441 = vst [vmem:[%s188_s27 + $0x28] sm:$0xff] %v433_v5 }
 0x315   : > { %v427_v0 = vpop.permute.xlu1 %426 }
 0x316   : > { %v434_v1 = vmul.f32 %v427_v0, %v894_v8  ;;  %v435_v2 = vmul.f32 %v427_v0, %v896_v9 }
 0x318   : > { %442 = vst [vmem:[%s188_s27 + $0x30] sm:$0xff] %v434_v1  ;;  %443 = vst [vmem:[%s188_s27 + $0x38] sm:$0xff] %v435_v2 }
 0x319   : > { %680 = shalt.err (!%p677_p2)
}
 0x31a   : > { %s681_s7 = scalar_lea.hbm %s931_s10, 1024  ;;  %s685_s19 = scalar_lea.hbm %s980_s3, 2048 }
 0x31b   : > { %p682_p4 = scmp.ne.s32.totalorder %s931_s10, %s681_s7  ;;  %p686_p9 = scmp.lt.u32.totalorder %s931_s10, %s980_s3 }
 0x31c   : > { %p687_p1 = scmp.lt.u32.totalorder %s685_s19, %s681_s7  ;;  %p689_p6 = scmp.lt.u32.totalorder %s681_s7, %s931_s10 }
 0x31d   : > { %p683_p5 = pnand %p682_p4, %p987_p11 }
 0x31e   : > { %p688_p3 = por %p687_p1, %p686_p9 }
 0x31f   : > { %p684_p7 = pneg %p683_p5 }
 0x320   : > { %p690_p12 = por %p689_p6, %p688_p3 }
 0x322   : > { %p691_p13 = pnand %p690_p12, %p684_p7 }
 0x324   : > { %694 = shalt.err (!%p691_p13)
}
 0x325   : > { %s742_s26 = smov 256   ;;  %s743_s27 = smov 16  }
 0x326   : > { %582 = dma.vmem_to_hbm [thread:$0]  (%p987_p11), %s926_s28, 1024, %s931_s10, %s445_s16, %s742_s26, %s742_s26, %s743_s27  }
 0x327 PF: > { %s473_s29 = sand.u32 1, %s721_s12   ;;  %p988_p8 = scmp.ne.s32.totalorder %s985_s25, 0 }
 0x328   : > { %p989_p10 = scmp.ge.s32.totalorder %s733_s15, 2  ;;  %s474_s30 = scalar_lea.sflag [#allocation4], %s473_s29 }
 0x32a   : > { %p589_p0 = pnand %p989_p10, %p988_p8 }
 0x32c   : > { %716 = dma.done.wait (!%p589_p0), %s474_s30, 1024  }
 0x32d   : > { %718 = vsyncadd (!%p589_p0), %s474_s30, 4294966272  ;;  %p16_p2 = scmp.ge.s32.totalorder %s789_s18, 4   ;;  %s990_s12 = smov %s725_s13 }
 0x32e   : > { %s991_s13 = smov %s729_s14  ;;  %s992_s14 = smov %s801_s21 }
 0x32f   : > { %s993_s15 = smov %s789_s18  ;;  %18 = sbr.rel (!%p16_p2) target bundleno = 5 (0x5), region = 77 }
 0x336   :  { %479 = vsyncpa [#allocation3], 1 }
 0x337   :  { %481 = vsyncpa [#allocation3 + $0x1], 1 }
 0x338   :  { %482 = vsyncpa [#allocation4], 1 }
 0x339   :  { %484 = vsyncpa [#allocation4 + $0x1], 1 }

</bundles_post_ra>
